<compile_context>
chip_gen: v7x
topology: tpu7x:2x2x1
jax: 0.10.0
libtpu: 0.0.40
codegen_flags: <defaults>
</compile_context>

<pallas_src>
import functools
import math

import jax
import jax.numpy as jnp
from jax.experimental import pallas as pl
from jax.experimental.pallas import tpu as pltpu

LANES = 128
SUBLANES = 8


def _awl_kernel(pred_ref, true_ref, out_ref, *,
                alpha, omega, epsilon, theta,
                tile_rows, rows_full, lane_rem):
    """Elementwise adaptive wing loss for one tile + (8,128) partial sum."""
    i = pl.program_id(0)

    yp = pred_ref[...].astype(jnp.float32)
    yt = true_ref[...].astype(jnp.float32)

    diff = jnp.abs(yp - yt)
    e = alpha - yt                                  # exponent (alpha - y_true)

    ratio = theta / epsilon
    if ratio > 0.0:
        # (theta/eps)^(alpha-y) = exp((alpha-y)*ln(theta/eps)) -> one EUP exp,
        # and the "-1" power is a single VPU multiply instead of another pow.
        ln_t = math.log(ratio)
        pw = jnp.exp(e * ln_t)
        pw_m1 = pw * (1.0 / ratio)                  # (theta/eps)^(alpha-y-1)
    else:
        # Degenerate hyperparameters: fall back to the literal formula.
        pw = jnp.power(ratio, e)
        pw_m1 = jnp.power(ratio, e - 1.0)

    log1p_pw = jnp.log(1.0 + pw)
    A = omega * (1.0 / (1.0 + pw)) * e * pw_m1 * (1.0 / epsilon)
    C = theta * A - omega * log1p_pw

    # Small-residual branch: omega * log(1 + (diff/eps)^alpha).  For integer
    # alpha (default 2.0) use plain multiplies (saves an exp+log per element
    # and avoids the log(0) corner case at diff == 0).
    x = diff * (1.0 / epsilon)
    if float(alpha).is_integer() and 1.0 <= alpha <= 4.0:
        xp = x
        for _ in range(int(alpha) - 1):
            xp = xp * x
    else:
        xp = jnp.power(x, alpha)
    small = omega * jnp.log(1.0 + xp)
    large = A * diff - C
    losses = jnp.where(diff < theta, small, large)

    # Mask padded lanes / out-of-range rows of a partial last block (their
    # VMEM contents are unspecified), independent of theta's sign.
    row = jax.lax.broadcasted_iota(jnp.int32, losses.shape, 0) + i * tile_rows
    col = jax.lax.broadcasted_iota(jnp.int32, losses.shape, 1)
    valid = (row < rows_full) | ((row == rows_full) & (col < lane_rem))
    losses = jnp.where(valid, losses, 0.0)

    # vreg-shaped partial sum: pure VPU adds, no cross-step scalar dependence.
    partial = losses.reshape(tile_rows // SUBLANES, SUBLANES, LANES).sum(axis=0)
    out_ref[...] = partial.reshape(1, SUBLANES, LANES)


def adaptive_wing_loss(y_pred, y_true, alpha=2.0, omega=14.0,
                       epsilon=1.0, theta=0.5):
    """Pallas TPU implementation of AdaptiveWingLoss.forward. Returns a scalar."""
    assert y_pred.shape == y_true.shape
    total_n = 1
    for d in y_pred.shape:
        total_n *= d

    # Flatten to a lane-dense [rows, 128] slab with rows % 8 == 0.  For the
    # usual heatmap sizes total_n is already a multiple of 1024, so this is a
    # zero-copy reshape (no extra HBM traffic); otherwise pad with zeros —
    # padded elements are masked out inside the kernel.
    align = SUBLANES * LANES
    pad = (-total_n) % align
    yp = jnp.reshape(y_pred, (-1,))
    yt = jnp.reshape(y_true, (-1,))
    if pad:
        yp = jnp.concatenate([yp, jnp.zeros((pad,), yp.dtype)])
        yt = jnp.concatenate([yt, jnp.zeros((pad,), yt.dtype)])
    rows = (total_n + pad) // LANES
    yp = yp.reshape(rows, LANES)
    yt = yt.reshape(rows, LANES)

    # Large fixed tile (~1 MiB/input/buffer in f32): 2 inputs x 2 buffers
    # ~= 4 MiB VMEM, safe under every generation's default scoped limit.
    tile_rows = min(2048, rows)          # both are multiples of 8
    nblocks = pl.cdiv(rows, tile_rows)

    kernel = functools.partial(
        _awl_kernel,
        alpha=float(alpha), omega=float(omega), epsilon=float(epsilon),
        theta=float(theta), tile_rows=tile_rows,
        rows_full=total_n // LANES, lane_rem=total_n % LANES)

    partials = pl.pallas_call(
        kernel,
        out_shape=jax.ShapeDtypeStruct((nblocks, SUBLANES, LANES), jnp.float32),
        grid_spec=pltpu.PrefetchScalarGridSpec(
            num_scalar_prefetch=0,
            grid=(nblocks,),
            in_specs=[
                pl.BlockSpec((tile_rows, LANES), lambda i: (i, 0)),
                pl.BlockSpec((tile_rows, LANES), lambda i: (i, 0)),
            ],
            out_specs=pl.BlockSpec((1, SUBLANES, LANES), lambda i: (i, 0, 0)),
        ),
        compiler_params=pltpu.CompilerParams(
            dimension_semantics=("parallel",)),
    )(yp, yt)

    # Tiny final reduction (nblocks x 8 x 128 f32) + mean in XLA.
    return jnp.sum(partials) / jnp.float32(total_n)


def _reference(y_pred, y_true, alpha=2.0, omega=14.0, epsilon=1.0, theta=0.5):
    """Plain-JAX reference mirroring the PyTorch forward."""
    diff = jnp.abs(y_pred - y_true)
    A = (omega * (1.0 / (1.0 + jnp.power(theta / epsilon, alpha - y_true)))
         * (alpha - y_true)
         * jnp.power(theta / epsilon, alpha - y_true - 1.0) * (1.0 / epsilon))
    C = theta * A - omega * jnp.log(1.0 + jnp.power(theta / epsilon, alpha - y_true))
    losses = jnp.where(diff < theta,
                       omega * jnp.log(1.0 + jnp.power(diff / epsilon, alpha)),
                       A * diff - C)
    return jnp.mean(losses)


if __name__ == "__main__":
    key = jax.random.PRNGKey(0)
    k1, k2 = jax.random.split(key)
    B, K, H, W = 2, 4, 16, 16
    # Heatmaps live in [0, 1].
    y_true = jax.random.uniform(k1, (B, K, H, W), dtype=jnp.float32)
    y_pred = jnp.clip(
        y_true + 0.3 * jax.random.normal(k2, (B, K, H, W), dtype=jnp.float32),
        0.0, 1.0)

    loss = adaptive_wing_loss(y_pred, y_true)
    loss = jax.block_until_ready(loss)

    ref = _reference(y_pred.astype(jnp.float32), y_true.astype(jnp.float32))
    assert jnp.allclose(loss, ref, rtol=1e-5, atol=1e-5), (loss, ref)

    print("KERNEL_OK")
</pallas_src>

<mosaic_0001>
module attributes {stable_mosaic.version = 11 : i64} {
  func.func @_awl_kernel(%arg0: i32, %arg1: memref<16x128xf32, #tpu.memory_space<vmem>>, %arg2: memref<16x128xf32, #tpu.memory_space<vmem>>, %arg3: memref<1x8x128xf32, #tpu.memory_space<vmem>>) attributes {dimension_semantics = [#tpu.dimension_semantics<parallel>], iteration_bounds = array<i64: 1>, scalar_prefetch = 0 : i64, scratch_operands = 0 : i64, tpu.core_type = #tpu.core_type<tc>, window_params = [{transform_indices = @transform_0, window_bounds = array<i64: 16, 128>}, {transform_indices = @transform_1, window_bounds = array<i64: 16, 128>}, {transform_indices = @transform_2, window_bounds = array<i64: 1, 8, 128>}]} {
    %c0 = arith.constant 0 : index
    %c0_0 = arith.constant 0 : index
    %0 = vector.load %arg1[%c0, %c0_0] : memref<16x128xf32, #tpu.memory_space<vmem>>, vector<16x128xf32>
    %c0_1 = arith.constant 0 : index
    %c0_2 = arith.constant 0 : index
    %1 = vector.load %arg2[%c0_1, %c0_2] : memref<16x128xf32, #tpu.memory_space<vmem>>, vector<16x128xf32>
    %2 = arith.subf %0, %1 : vector<16x128xf32>
    %3 = math.absf %2 : vector<16x128xf32>
    %cst = arith.constant 2.000000e+00 : f32
    %4 = vector.broadcast %cst : f32 to vector<16x128xf32>
    %5 = arith.subf %4, %1 : vector<16x128xf32>
    %cst_3 = arith.constant -0.693147182 : f32
    %6 = vector.broadcast %cst_3 : f32 to vector<16x128xf32>
    %7 = arith.mulf %5, %6 : vector<16x128xf32>
    %8 = math.exp %7 : vector<16x128xf32>
    %cst_4 = arith.constant 2.000000e+00 : f32
    %9 = vector.broadcast %cst_4 : f32 to vector<16x128xf32>
    %10 = arith.mulf %8, %9 : vector<16x128xf32>
    %cst_5 = arith.constant 1.000000e+00 : f32
    %11 = vector.broadcast %cst_5 : f32 to vector<16x128xf32>
    %12 = arith.addf %11, %8 : vector<16x128xf32>
    %13 = math.log %12 : vector<16x128xf32>
    %cst_6 = arith.constant 1.000000e+00 : f32
    %14 = vector.broadcast %cst_6 : f32 to vector<16x128xf32>
    %15 = arith.addf %14, %8 : vector<16x128xf32>
    %cst_7 = arith.constant 1.000000e+00 : f32
    %16 = vector.broadcast %cst_7 : f32 to vector<16x128xf32>
    %17 = arith.divf %16, %15 : vector<16x128xf32>
    %cst_8 = arith.constant 1.400000e+01 : f32
    %18 = vector.broadcast %cst_8 : f32 to vector<16x128xf32>
    %19 = arith.mulf %18, %17 : vector<16x128xf32>
    %20 = arith.mulf %19, %5 : vector<16x128xf32>
    %21 = arith.mulf %20, %10 : vector<16x128xf32>
    %cst_9 = arith.constant 1.000000e+00 : f32
    %22 = vector.broadcast %cst_9 : f32 to vector<16x128xf32>
    %23 = arith.mulf %21, %22 : vector<16x128xf32>
    %cst_10 = arith.constant 5.000000e-01 : f32
    %24 = vector.broadcast %cst_10 : f32 to vector<16x128xf32>
    %25 = arith.mulf %24, %23 : vector<16x128xf32>
    %cst_11 = arith.constant 1.400000e+01 : f32
    %26 = vector.broadcast %cst_11 : f32 to vector<16x128xf32>
    %27 = arith.mulf %26, %13 : vector<16x128xf32>
    %28 = arith.subf %25, %27 : vector<16x128xf32>
    %cst_12 = arith.constant 1.000000e+00 : f32
    %29 = vector.broadcast %cst_12 : f32 to vector<16x128xf32>
    %30 = arith.mulf %3, %29 : vector<16x128xf32>
    %31 = arith.mulf %30, %30 : vector<16x128xf32>
    %cst_13 = arith.constant 1.000000e+00 : f32
    %32 = vector.broadcast %cst_13 : f32 to vector<16x128xf32>
    %33 = arith.addf %32, %31 : vector<16x128xf32>
    %34 = math.log %33 : vector<16x128xf32>
    %cst_14 = arith.constant 1.400000e+01 : f32
    %35 = vector.broadcast %cst_14 : f32 to vector<16x128xf32>
    %36 = arith.mulf %35, %34 : vector<16x128xf32>
    %37 = arith.mulf %23, %3 : vector<16x128xf32>
    %38 = arith.subf %37, %28 : vector<16x128xf32>
    %cst_15 = arith.constant 5.000000e-01 : f32
    %39 = vector.broadcast %cst_15 : f32 to vector<16x128xf32>
    %40 = arith.cmpf olt, %3, %39 : vector<16x128xf32>
    %41 = arith.select %40, %36, %38 : vector<16x128xi1>, vector<16x128xf32>
    %42 = tpu.iota {dimensions = array<i32: 0>} : vector<16x128xi32>
    %c16_i32 = arith.constant 16 : i32
    %43 = arith.muli %arg0, %c16_i32 : i32
    %44 = vector.broadcast %43 : i32 to vector<16x128xi32>
    %45 = arith.addi %42, %44 : vector<16x128xi32>
    %46 = tpu.iota {dimensions = array<i32: 1>} : vector<16x128xi32>
    %c16_i32_16 = arith.constant 16 : i32
    %47 = vector.broadcast %c16_i32_16 : i32 to vector<16x128xi32>
    %48 = arith.cmpi slt, %45, %47 : vector<16x128xi32>
    %c16_i32_17 = arith.constant 16 : i32
    %49 = vector.broadcast %c16_i32_17 : i32 to vector<16x128xi32>
    %50 = arith.cmpi eq, %45, %49 : vector<16x128xi32>
    %c0_i32 = arith.constant 0 : i32
    %51 = vector.broadcast %c0_i32 : i32 to vector<16x128xi32>
    %52 = arith.cmpi slt, %46, %51 : vector<16x128xi32>
    %53 = arith.andi %50, %52 : vector<16x128xi1>
    %54 = arith.ori %48, %53 : vector<16x128xi1>
    %cst_18 = arith.constant 0.000000e+00 : f32
    %55 = vector.broadcast %cst_18 : f32 to vector<16x128xf32>
    %56 = arith.select %54, %41, %55 : vector<16x128xi1>, vector<16x128xf32>
    %57 = vector.shape_cast %56 : vector<16x128xf32> to vector<2x8x128xf32>
    %cst_19 = arith.constant dense<0.000000e+00> : vector<8x128xf32>
    %58 = vector.multi_reduction <add>, %57, %cst_19 [0] : vector<2x8x128xf32> to vector<8x128xf32>
    %59 = vector.shape_cast %58 : vector<8x128xf32> to vector<1x8x128xf32>
    %c0_20 = arith.constant 0 : index
    %c0_21 = arith.constant 0 : index
    %c0_22 = arith.constant 0 : index
    %60 = vector.load %arg3[%c0_20, %c0_21, %c0_22] : memref<1x8x128xf32, #tpu.memory_space<vmem>>, vector<1x8x128xf32>
    tpu.vector_store %arg3[%c0_20, %c0_21, %c0_22], %59 {strides = array<i32>} : memref<1x8x128xf32, #tpu.memory_space<vmem>>, vector<1x8x128xf32>,
    return
  }
  func.func @transform_0(%arg0: i32) -> (i32, i32) {
    %c0_i32 = arith.constant 0 : i32
    %c0_i32_0 = arith.constant 0 : i32
    return %arg0, %c0_i32 : i32, i32
  }
  func.func @transform_1(%arg0: i32) -> (i32, i32) {
    %c0_i32 = arith.constant 0 : i32
    %c0_i32_0 = arith.constant 0 : i32
    return %arg0, %c0_i32 : i32, i32
  }
  func.func @transform_2(%arg0: i32) -> (i32, i32, i32) {
    %c0_i32 = arith.constant 0 : i32
    %c0_i32_0 = arith.constant 0 : i32
    %c0_i32_1 = arith.constant 0 : i32
    return %arg0, %c0_i32, %c0_i32_0 : i32, i32, i32
  }
}

</mosaic_0001>

<bundles_post_ra>
// kernel: tpu_custom_call.1
= control target key start
LH: loop header
LB: loop body
LE: loop exit
PB: predicated region body
PF: predicated region fallthrough
CT: control target
= control target key end

     0   :  { %7 = vsyncpa [#allocation3], 0  ;;  %s285_s0 = inlined_call_operand.hbm [shape: f32[16,128], index: 0, kind: input, shape index: {}]   ;;  %s286_s1 = inlined_call_operand.hbm [shape: f32[16,128], index: 1, kind: input, shape index: {}]   ;;  %s287_s2 = inlined_call_operand.hbm [shape: f32[1,8,128], index: 2, kind: output, shape index: {}]  }
   0x1   :  { %8 = vsyncpa [#allocation6], 0 }
   0x2   :  { %9 = vsyncpa [#allocation4], 0  ;;  %s229_s9 = smov [#allocation2]   ;;  %s157_s13 = scalar_lea.hbm %s285_s0, 256 }
   0x3   :  { %s15_s10 = sshll.u32 %s229_s9, 4  ;;  %p158_p0 = scmp.ne.s32.totalorder %s285_s0, %s157_s13  ;;  %s16_s10 = int_to_ptr.vmem [resolvable:$true] %s15_s10 }
   0x4   :  { %p161_p1 = scmp.lt.u32.totalorder %s157_s13, %s285_s0 }
   0x6   :  { %p163_p2 = pnand %p161_p1, %p158_p0 }
   0x8   :  { %166 = shalt.err (!%p163_p2)
}
   0x9   :  { %s167_s18 = scalar_lea.vmem %s16_s10, 256  ;;  %p172_p4 = scmp.lt.s32.totalorder %s16_s10, %s16_s10 }
   0xa   :  { %p168_p3 = scmp.ne.s32.totalorder %s16_s10, %s167_s18  ;;  %p173_p5 = scmp.lt.s32.totalorder %s167_s18, %s167_s18 }
   0xc   :  { %p174_p6 = por %p173_p5, %p172_p4 }
   0xe   :  { %p175_p7 = pnand %p174_p6, %p168_p3 }
  0x10   :  { %178 = shalt.err (!%p175_p7)
}
  0x11   :  { %s230_s19 = smov 128   ;;  %s231_s20 = smov 8  }
  0x12   :  { %21 = dma.hbm_to_vmem [thread:$0]  %s285_s0, 256, %s16_s10, [#allocation3], %s230_s19, %s230_s19, %s231_s20  }
  0x13   :  { %s232_s23 = smov [#allocation5]   ;;  %s179_s27 = scalar_lea.hbm %s286_s1, 256 }
  0x14   :  { %s27_s24 = sshll.u32 %s232_s23, 4  ;;  %p180_p8 = scmp.ne.s32.totalorder %s286_s1, %s179_s27  ;;  %s28_s24 = int_to_ptr.vmem [resolvable:$true] %s27_s24 }
  0x15   :  { %p183_p9 = scmp.lt.u32.totalorder %s179_s27, %s286_s1 }
  0x17   :  { %p185_p10 = pnand %p183_p9, %p180_p8 }
  0x19   :  { %188 = shalt.err (!%p185_p10)
}
  0x1a   :  { %s189_s4 = scalar_lea.vmem %s28_s24, 256  ;;  %p194_p12 = scmp.lt.s32.totalorder %s28_s24, %s28_s24 }
  0x1b   :  { %p190_p11 = scmp.ne.s32.totalorder %s28_s24, %s189_s4  ;;  %p195_p13 = scmp.lt.s32.totalorder %s189_s4, %s189_s4 }
  0x1d   :  { %p196_p0 = por %p195_p13, %p194_p12 }
  0x1f   :  { %p197_p1 = pnand %p196_p0, %p190_p11 }
  0x21   :  { %200 = shalt.err (!%p197_p1)
}
  0x22   :  { %33 = dma.hbm_to_vmem [thread:$0]  %s286_s1, 256, %s28_s24, [#allocation6], %s230_s19, %s230_s19, %s231_s20  }
  0x23   :  { %223 = dma.done.wait [#allocation3], 256  }
  0x24   :  { %224 = vsyncadd [#allocation3], 4294967040 }
  0x25   :  { %225 = dma.done.wait [#allocation6], 256  }
  0x26   :  { %226 = vsyncadd [#allocation6], 4294967040  ;;  %v42_v0 = vld [vmem:[#allocation5] sm:$0xff]  ;;  %v43_v1 = vld [vmem:[#allocation5 + $0x8] sm:$0xff]  ;;  %s233_s1 = smov [#allocation7]  }
  0x27   :  { %v48_v2 = vsub.f32 2.0, %v42_v0  ;;  %v49_v3 = vsub.f32 2.0, %v43_v1  ;;  %v40_v6 = vld [vmem:[#allocation2] sm:$0xff]  ;;  %v41_v8 = vld [vmem:[#allocation2 + $0x8] sm:$0xff]  ;;  %s126_s6 = sshll.u32 %s233_s1, 4  ;;  %s127_s6 = int_to_ptr.vmem [resolvable:$true] %s126_s6 }
  0x28   :  { %v44_v10 = vsub.f32 %v40_v6, %v42_v0  ;;  %v45_v11 = vsub.f32 %v41_v8, %v43_v1  ;;  %s201_s7 = scalar_lea.vmem %s127_s6, 128  ;;  %p206_p3 = scmp.lt.s32.totalorder %s127_s6, %s127_s6 }
  0x29   :  { %v50_v4 = vmul.f32 -0.6931472, %v48_v2  ;;  %v51_v5 = vmul.f32 -0.6931472, %v49_v3  ;;  %p202_p2 = scmp.ne.s32.totalorder %s127_s6, %s201_s7  ;;  %p207_p4 = scmp.lt.s32.totalorder %s201_s7, %s201_s7 }
  0x2a   :  { %v46_v12 = vand.u32 2147483647, %v44_v10  ;;  %v47_v13 = vand.u32 2147483647, %v45_v11 }
  0x2b   :  { %v52_v7 = vmul.f32 1.442695, %v50_v4  ;;  %v54_v9 = vmul.f32 1.442695, %v51_v5  ;;  %p208_p5 = por %p207_p4, %p206_p3 }
  0x2c   :  { %v80_v14 = vmul.f32 %v46_v12, %v46_v12  ;;  %v81_v16 = vmul.f32 %v47_v13, %v47_v13  ;;  %vm94_vm0 = vcmp.lt.f32.partialorder %v46_v12, 0.5  ;;  %vm95_vm1 = vcmp.lt.f32.partialorder %v47_v13, 0.5 }
  0x2d   :  { %141 = vpow2.f32 %v52_v7  ;;  %p209_p6 = pnand %p208_p5, %p202_p2 }
  0x2e   :  { %143 = vpow2.f32 %v54_v9  ;;  %v82_v20 = vadd.f32 1.0, %v80_v14  ;;  %v83_v21 = vadd.f32 1.0, %v81_v16 }
  0x37   :  { %v142_v15 = vpop.eup %141 }
  0x38   :  { %v144_v17 = vpop.eup %143  ;;  %v58_v18 = vadd.f32 1.0, %v142_v15  ;;  %v56_v26 = vmul.f32 2.0, %v142_v15 }
  0x39   :  { %v59_v19 = vadd.f32 1.0, %v144_v17  ;;  %v57_v30 = vmul.f32 2.0, %v144_v17 }
  0x3a   :  { %145 = vlog2.f32 %v58_v18 }
  0x3b   :  { %147 = vlog2.f32 %v59_v19 }
  0x3c   :  { %149 = vrcp.f32 %v58_v18 }
  0x3d   :  { %151 = vrcp.f32 %v59_v19 }
  0x3e   :  { %153 = vlog2.f32 %v82_v20 }
  0x3f   :  { %155 = vlog2.f32 %v83_v21 }
  0x44   :  { %v146_v22 = vpop.eup %145 }
  0x45   :  { %v148_v23 = vpop.eup %147  ;;  %v61_v27 = vmul.f32 0.6931472, %v146_v22 }
  0x46   :  { %v150_v24 = vpop.eup %149  ;;  %v63_v31 = vmul.f32 0.6931472, %v148_v23 }
  0x47   :  { %v152_v25 = vpop.eup %151  ;;  %v68_v28 = vmul.f32 14.0, %v150_v24  ;;  %v76_v37 = vmul.f32 14.0, %v61_v27 }
  0x48   :  { %v154_v29 = vpop.eup %153  ;;  %v69_v32 = vmul.f32 14.0, %v152_v25  ;;  %v77_v40 = vmul.f32 14.0, %v63_v31 }
  0x49   :  { %v156_v33 = vpop.eup %155  ;;  %v70_v34 = vmul.f32 %v68_v28, %v48_v2  ;;  %v85_v38 = vmul.f32 0.6931472, %v154_v29 }
  0x4a   :  { %v71_v35 = vmul.f32 %v69_v32, %v49_v3  ;;  %v87_v41 = vmul.f32 0.6931472, %v156_v33 }
  0x4b   :  { %v72_v36 = vmul.f32 %v70_v34, %v56_v26  ;;  %v88_v47 = vmul.f32 14.0, %v85_v38 }
  0x4c   :  { %v73_v39 = vmul.f32 %v71_v35, %v57_v30  ;;  %v89_v49 = vmul.f32 14.0, %v87_v41 }
  0x4d   :  { %v74_v42 = vmul.f32 0.5, %v72_v36  ;;  %v90_v43 = vmul.f32 %v72_v36, %v46_v12 }
  0x4e   :  { %v75_v44 = vmul.f32 0.5, %v73_v39  ;;  %v91_v45 = vmul.f32 %v73_v39, %v47_v13 }
  0x4f   :  { %v78_v46 = vsub.f32 %v74_v42, %v76_v37 }
  0x50   :  { %v79_v48 = vsub.f32 %v75_v44, %v77_v40 }
  0x51   :  { %v92_v50 = vsub.f32 %v90_v43, %v78_v46 }
  0x52   :  { %v93_v51 = vsub.f32 %v91_v45, %v79_v48 }
  0x53   :  { %v96_v52 = vsel %vm94_vm0, %v88_v47, %v92_v50 }
  0x54   :  { %v97_v53 = vsel %vm95_vm1, %v89_v49, %v93_v51 }
  0x55   :  { %v118_v54 = vadd.f32 %v97_v53, %v96_v52 }
  0x57   :  { %119 = vst [vmem:[#allocation7] sm:$0xff] %v118_v54 }
  0x58   :  { %212 = shalt.err (!%p209_p6)
}
  0x59   :  { %s213_s10 = scalar_lea.hbm %s287_s2, 128 }
  0x5a   :  { %p214_p7 = scmp.ne.s32.totalorder %s287_s2, %s213_s10  ;;  %p217_p8 = scmp.lt.u32.totalorder %s213_s10, %s287_s2 }
  0x5c   :  { %p219_p9 = pnand %p217_p8, %p214_p7 }
  0x5e   :  { %222 = shalt.err (!%p219_p9)
}
  0x5f   :  { %129 = dma.vmem_to_hbm [thread:$0]  %s127_s6, 128, %s287_s2, [#allocation4]  }
  0x60   :  { %227 = dma.done.wait [#allocation4], 128  }
  0x61   :  { %228 = vsyncadd [#allocation4], 4294967168 }
  0x62   :  { %133 = vsyncpa [#allocation3], 1 }
  0x63   :  { %134 = vsyncpa [#allocation6], 1 }
  0x64   :  { %135 = vsyncpa [#allocation4], 1 }

</bundles_post_ra>
